<compile_context>
chip_gen: v6e
topology: v6e:2x2x1
jax: 0.10.0
libtpu: 0.0.40
codegen_flags: <defaults>
</compile_context>

<pallas_src>
import functools

import jax
import jax.numpy as jnp
from jax.experimental import pallas as pl
from jax.experimental.pallas import tpu as pltpu


_TILE_P = 8192                   # pixel tile (lanes); multiple of 128
_VMEM_LIMIT = 32 * 1024 * 1024   # fits the scoped default on v5e/v6e/v7x


def _round_up(x, m):
    return ((x + m - 1) // m) * m


# ----------------------------------------------------------------------------
# Kernel 1: fused channel-softmax + packed per-class sort key
#   inputs : logits (B, C, HW) block (1, C, tile_p)   [squeezed to (C, tile_p)]
#            labels (B, 1, HW) block (1, 1, tile_p)   [squeezed to (1, tile_p)]
#   output : key    (C, P_pad) block (C, tile_p), P_pad = B * tiles * tile_p
#   key = -|fg - softmax(logits)| with fg packed in the mantissa LSB; ignored
#   and out-of-image (ragged tail) pixels get key = +1.0 (sorts last, err 0).
# ----------------------------------------------------------------------------
def _softmax_key_kernel(logits_ref, labels_ref, key_ref, *, ignore_index, hw):
    tile_p = key_ref.shape[-1]
    logits = logits_ref[...].astype(jnp.float32)           # (C, tile_p)
    labels = labels_ref[...]                                # (1, tile_p) int32

    # Mask the ragged pixel tail of the last tile of each image (garbage DMA).
    lane = jax.lax.broadcasted_iota(jnp.int32, labels.shape, 1)
    in_image = (pl.program_id(1) * tile_p + lane) < hw
    valid = jnp.logical_and(labels != ignore_index, in_image)   # (1, tile_p)

    # softmax over classes (sublane axis 0); reciprocal on the EUP slot.
    m = jnp.max(logits, axis=0, keepdims=True)
    e = jnp.exp(logits - m)
    probs = e * pl.reciprocal(jnp.sum(e, axis=0, keepdims=True), approx=False)

    cls = jax.lax.broadcasted_iota(jnp.int32, logits.shape, 0)
    fg = labels == cls                                      # (C, tile_p) bool
    errors = jnp.abs(fg.astype(jnp.float32) - probs)        # in [0, 1]

    # Pack fg into the mantissa LSB of (-error): ascending sort on the packed
    # key == descending sort on error (ties / 1-ulp swaps do not change the
    # Lovasz value); fg and err are re-derived in kernel 2.
    bits = pltpu.bitcast(-errors, jnp.int32)
    bits = (bits & jnp.int32(-2)) | jnp.where(fg, 1, 0)
    packed = pltpu.bitcast(bits, jnp.float32)
    key_ref[...] = jnp.where(valid, packed, jnp.float32(1.0))


# ----------------------------------------------------------------------------
# Kernel 2: streaming Lovasz gradient + dot, strip-mined, MXU cumsum
# ----------------------------------------------------------------------------
def _lovasz_grad_dot_kernel(key_ref, gts_ref, tri_ref, loss_ref,
                            carry_fg, prev_jacc):
    t = pl.program_id(0)
    c_rows, tile_p = key_ref.shape
    strip = tri_ref.shape[0]
    n_strips = tile_p // strip

    @pl.when(t == 0)
    def _init():
        loss_ref[...] = jnp.zeros_like(loss_ref)
        carry_fg[...] = jnp.zeros_like(carry_fg)
        prev_jacc[...] = jnp.zeros_like(prev_jacc)

    gts = gts_ref[...]                                      # (C, 1) f32
    tri = tri_ref[...]                                      # (strip, strip) bf16
    # Hoisted broadcasts (JAX does not CSE broadcast_in_dim inside the loop).
    lane_i = jax.lax.broadcasted_iota(jnp.int32, (c_rows, strip), 1)
    lane_f = lane_i.astype(jnp.float32)
    is_first_lane = lane_i == 0
    tile_base = t * tile_p

    def strip_body(s, carry):
        loss_acc, cfg, pj = carry
        off = pl.multiple_of(s * strip, strip)
        key = key_ref[:, pl.ds(off, strip)]                 # (C, strip) f32

        bits = pltpu.bitcast(key, jnp.int32)
        fg = (bits & 1).astype(jnp.float32)                 # packed LSB
        err = jnp.maximum(-key, 0.0)                        # 0 on ignored/padded

        # Strip-local inclusive cumsum on the MXU (exact: fg in {0,1} in bf16),
        # then add the per-class carry for the global inclusive cumsum.
        lcs = jnp.dot(fg.astype(jnp.bfloat16), tri,
                      preferred_element_type=jnp.float32)
        csum = lcs + cfg                                    # (C, strip)

        # Valid pixels sort strictly before ignored/padded ones, so the global
        # position doubles as cumsum(valid) for every contributing entry.
        rank1 = lane_f + (tile_base + s * strip + 1).astype(jnp.float32)
        inter = gts - csum
        union = gts + rank1 - csum                          # >= 1 where err > 0
        jacc = 1.0 - inter * pl.reciprocal(union, approx=False)

        # grad[0] = jacc[0]; grad[j] = jacc[j] - jacc[j-1]  (carried across
        # strips and tiles via prev_jacc).
        prev = pltpu.roll(jacc, shift=1, axis=1)
        prev = jnp.where(is_first_lane, pj, prev)
        grad = jacc - prev

        loss_acc = loss_acc + jnp.sum(err * grad, axis=1, keepdims=True)
        return (loss_acc,
                csum[:, strip - 1:strip],
                jacc[:, strip - 1:strip])

    init = (jnp.zeros_like(gts), carry_fg[...], prev_jacc[...])
    loss_part, cfg, pj = jax.lax.fori_loop(
        0, n_strips, strip_body, init, unroll=min(n_strips, 8))

    loss_ref[...] += loss_part
    carry_fg[...] = cfg
    prev_jacc[...] = pj


# ----------------------------------------------------------------------------
# Wrapper
# ----------------------------------------------------------------------------
def lovasz_softmax_loss(output, target, ignore_index=255, tile_p=_TILE_P):
    output = jnp.asarray(output)
    if output.dtype not in (jnp.bfloat16, jnp.float16, jnp.float32):
        output = output.astype(jnp.float32)
    B, C, H, W = output.shape
    HW = H * W
    tp = min(tile_p, _round_up(HW, 128))
    num_tiles = pl.cdiv(HW, tp)
    P_pad = B * num_tiles * tp

    # Free reshapes only: the NCHW->(C, P) transpose is fused into kernel 1's
    # BlockSpecs (full-C blocks per image), and padding is done in-kernel.
    logits3 = output.reshape(B, C, HW)
    labels3 = jnp.asarray(target).reshape(B, 1, HW).astype(jnp.int32)

    key = pl.pallas_call(
        functools.partial(_softmax_key_kernel,
                          ignore_index=ignore_index, hw=HW),
        out_shape=jax.ShapeDtypeStruct((C, P_pad), jnp.float32),
        grid=(B, num_tiles),
        in_specs=[pl.BlockSpec((None, C, tp), lambda b, i: (b, 0, i)),
                  pl.BlockSpec((None, 1, tp), lambda b, i: (b, 0, i))],
        out_specs=pl.BlockSpec((C, tp), lambda b, i: (0, b * num_tiles + i)),
        compiler_params=pltpu.CompilerParams(
            dimension_semantics=("parallel", "parallel"),
            vmem_limit_bytes=_VMEM_LIMIT),
    )(logits3, labels3)

    # Per-class foreground count among valid pixels (permutation-invariant;
    # one fused XLA pass over the int32 labels) and the 'present' mask.
    labels_flat = labels3.reshape(1, -1)
    cls_ids = jnp.arange(C, dtype=jnp.int32)[:, None]
    gts = jnp.sum(jnp.logical_and(labels_flat == cls_ids,
                                  labels_flat != ignore_index),
                  axis=1, keepdims=True).astype(jnp.float32)     # (C, 1)
    present = (gts > 0.0).astype(jnp.float32)

    # TODO(synk): the per-class descending error sort has no clean
    # Pallas/Mosaic equivalent; done with jax.lax.sort (single packed f32
    # operand, only the real C rows, unstable — ties do not affect the loss).
    key_sorted = jax.lax.sort(key, dimension=1, is_stable=False)

    # Constant upper-triangular ones matrix for the MXU inclusive cumsum.
    strip = 256 if tp % 256 == 0 else 128
    tri = jnp.triu(jnp.ones((strip, strip), dtype=jnp.bfloat16))

    # TODO(synk): on v7x (2 TensorCores) kernel 2 could add a leading
    # 'parallel' grid axis over class-row groups (carries are per-class);
    # omitted here since typical C is small.
    loss_c = pl.pallas_call(
        _lovasz_grad_dot_kernel,
        out_shape=jax.ShapeDtypeStruct((C, 1), jnp.float32),
        grid=(P_pad // tp,),
        in_specs=[pl.BlockSpec((C, tp), lambda i: (0, i)),
                  pl.BlockSpec((C, 1), lambda i: (0, 0)),
                  pl.BlockSpec((strip, strip), lambda i: (0, 0))],
        out_specs=pl.BlockSpec((C, 1), lambda i: (0, 0)),
        scratch_shapes=[pltpu.VMEM((C, 1), jnp.float32),
                        pltpu.VMEM((C, 1), jnp.float32)],
        compiler_params=pltpu.CompilerParams(
            dimension_semantics=("arbitrary",),
            vmem_limit_bytes=_VMEM_LIMIT),
    )(key_sorted, gts, tri)

    # classes='present': mean over classes appearing among the valid pixels.
    # (Reference yields NaN when no class is present; we return 0 instead.)
    n_present = jnp.sum(present)
    return jnp.sum(loss_c * present) / jnp.maximum(n_present, 1.0)


class LovaszSoftmax:
    """JAX/Pallas counterpart of the PyTorch LovaszSoftmax module (no params)."""

    def __init__(self, classes='present', per_image=False, ignore_index=255):
        # The reference forward only uses ignore_index; lovasz_softmax is
        # called with its defaults (classes='present', per_image=False).
        self.classes = classes
        self.per_image = per_image
        self.ignore_index = ignore_index

    def __call__(self, output, target):
        return lovasz_softmax_loss(output, target, self.ignore_index)


if __name__ == "__main__":
    key = jax.random.PRNGKey(0)
    k1, k2, k3 = jax.random.split(key, 3)
    B, C, H, W = 2, 4, 16, 16

    logits = jax.random.normal(k1, (B, C, H, W), dtype=jnp.float32)
    labels = jax.random.randint(k2, (B, H, W), 0, C, dtype=jnp.int32)
    # sprinkle some ignored pixels (ignore_index = 255)
    labels = jnp.where(jax.random.uniform(k3, (B, H, W)) < 0.1, 255, labels)

    loss_mod = LovaszSoftmax()
    loss = jax.jit(loss_mod.__call__)(logits, labels)
    loss = jax.block_until_ready(loss)
    assert loss.shape == () and bool(jnp.isfinite(loss))
    print("KERNEL_OK")
</pallas_src>

<mosaic_0001>
module attributes {stable_mosaic.version = 11 : i64} {
  func.func @_softmax_key_kernel(%arg0: i32, %arg1: i32, %arg2: memref<1x4x256xf32, #tpu.memory_space<vmem>>, %arg3: memref<1x1x256xi32, #tpu.memory_space<vmem>>, %arg4: memref<4x256xf32, #tpu.memory_space<vmem>>) attributes {dimension_semantics = [#tpu.dimension_semantics<parallel>, #tpu.dimension_semantics<parallel>], iteration_bounds = array<i64: 2, 1>, scalar_prefetch = 0 : i64, scratch_operands = 0 : i64, tpu.core_type = #tpu.core_type<tc>, window_params = [{transform_indices = @transform_0, window_bounds = array<i64: 1, 4, 256>}, {transform_indices = @transform_1, window_bounds = array<i64: 1, 1, 256>}, {transform_indices = @transform_2, window_bounds = array<i64: 4, 256>}]} {
    %c0 = arith.constant 0 : index
    %c0_0 = arith.constant 0 : index
    %c0_1 = arith.constant 0 : index
    %0 = vector.load %arg2[%c0, %c0_0, %c0_1] : memref<1x4x256xf32, #tpu.memory_space<vmem>>, vector<1x4x256xf32>
    %1 = vector.shape_cast %0 : vector<1x4x256xf32> to vector<4x256xf32>
    %c0_2 = arith.constant 0 : index
    %c0_3 = arith.constant 0 : index
    %c0_4 = arith.constant 0 : index
    %2 = vector.load %arg3[%c0_2, %c0_3, %c0_4] : memref<1x1x256xi32, #tpu.memory_space<vmem>>, vector<1x1x256xi32>
    %3 = vector.shape_cast %2 : vector<1x1x256xi32> to vector<1x256xi32>
    %4 = tpu.iota {dimensions = array<i32: 1>} : vector<1x256xi32>
    %c256_i32 = arith.constant 256 : i32
    %5 = arith.muli %arg1, %c256_i32 : i32
    %6 = vector.broadcast %5 : i32 to vector<1x256xi32>
    %7 = arith.addi %6, %4 : vector<1x256xi32>
    %c256_i32_5 = arith.constant 256 : i32
    %8 = vector.broadcast %c256_i32_5 : i32 to vector<1x256xi32>
    %9 = arith.cmpi slt, %7, %8 : vector<1x256xi32>
    %c255_i32 = arith.constant 255 : i32
    %10 = vector.broadcast %c255_i32 : i32 to vector<1x256xi32>
    %11 = arith.cmpi ne, %3, %10 : vector<1x256xi32>
    %12 = arith.andi %11, %9 : vector<1x256xi1>
    %cst = arith.constant dense<0xFF800000> : vector<256xf32>
    %13 = vector.multi_reduction <maximumf>, %1, %cst [0] : vector<4x256xf32> to vector<256xf32>
    %14 = vector.shape_cast %13 : vector<256xf32> to vector<1x256xf32>
    %15 = vector.broadcast %14 : vector<1x256xf32> to vector<4x256xf32>
    %16 = arith.subf %1, %15 : vector<4x256xf32>
    %17 = math.exp %16 : vector<4x256xf32>
    %cst_6 = arith.constant dense<0.000000e+00> : vector<256xf32>
    %18 = vector.multi_reduction <add>, %17, %cst_6 [0] : vector<4x256xf32> to vector<256xf32>
    %19 = vector.shape_cast %18 : vector<256xf32> to vector<1x256xf32>
    %20 = tpu.reciprocal %19 : vector<1x256xf32> -> vector<1x256xf32>
    %21 = vector.broadcast %20 : vector<1x256xf32> to vector<4x256xf32>
    %22 = arith.mulf %17, %21 : vector<4x256xf32>
    %23 = tpu.iota {dimensions = array<i32: 0>} : vector<4x256xi32>
    %24 = vector.broadcast %3 : vector<1x256xi32> to vector<4x256xi32>
    %25 = arith.cmpi eq, %24, %23 : vector<4x256xi32>
    %26 = arith.extui %25 : vector<4x256xi1> to vector<4x256xi32>
    %27 = arith.sitofp %26 : vector<4x256xi32> to vector<4x256xf32>
    %28 = arith.subf %27, %22 : vector<4x256xf32>
    %29 = math.absf %28 : vector<4x256xf32>
    %cst_7 = arith.constant 0.000000e+00 : f32
    %30 = vector.broadcast %cst_7 : f32 to vector<4x256xf32>
    %31 = arith.subf %30, %29 : vector<4x256xf32>
    %32 = tpu.bitcast %31 : vector<4x256xf32> -> vector<4x256xi32>
    %c-2_i32 = arith.constant -2 : i32
    %33 = vector.broadcast %c-2_i32 : i32 to vector<4x256xi32>
    %34 = arith.andi %32, %33 : vector<4x256xi32>
    %c1_i32 = arith.constant 1 : i32
    %c0_i32 = arith.constant 0 : i32
    %35 = vector.broadcast %c1_i32 : i32 to vector<4x256xi32>
    %36 = vector.broadcast %c0_i32 : i32 to vector<4x256xi32>
    %37 = arith.select %25, %35, %36 : vector<4x256xi1>, vector<4x256xi32>
    %38 = arith.ori %34, %37 : vector<4x256xi32>
    %39 = tpu.bitcast %38 : vector<4x256xi32> -> vector<4x256xf32>
    %cst_8 = arith.constant 1.000000e+00 : f32
    %40 = vector.shape_cast %12 : vector<1x256xi1> to vector<1x256xi1>
    %41 = vector.broadcast %40 : vector<1x256xi1> to vector<4x256xi1>
    %42 = vector.broadcast %cst_8 : f32 to vector<4x256xf32>
    %43 = arith.select %41, %39, %42 : vector<4x256xi1>, vector<4x256xf32>
    %c0_9 = arith.constant 0 : index
    %c0_10 = arith.constant 0 : index
    %44 = vector.load %arg4[%c0_9, %c0_10] : memref<4x256xf32, #tpu.memory_space<vmem>>, vector<4x256xf32>
    tpu.vector_store %arg4[%c0_9, %c0_10], %43 {strides = array<i32>} : memref<4x256xf32, #tpu.memory_space<vmem>>, vector<4x256xf32>,
    return
  }
  func.func @transform_0(%arg0: i32, %arg1: i32) -> (i32, i32, i32) {
    %c0_i32 = arith.constant 0 : i32
    %c0_i32_0 = arith.constant 0 : i32
    return %arg0, %c0_i32, %arg1 : i32, i32, i32
  }
  func.func @transform_1(%arg0: i32, %arg1: i32) -> (i32, i32, i32) {
    %c0_i32 = arith.constant 0 : i32
    %c0_i32_0 = arith.constant 0 : i32
    return %arg0, %c0_i32, %arg1 : i32, i32, i32
  }
  func.func @transform_2(%arg0: i32, %arg1: i32) -> (i32, i32) {
    %c1_i32 = arith.constant 1 : i32
    %0 = arith.muli %arg0, %c1_i32 : i32
    %1 = arith.addi %0, %arg1 : i32
    %c0_i32 = arith.constant 0 : i32
    %c0_i32_0 = arith.constant 0 : i32
    return %c0_i32, %1 : i32, i32
  }
}

module attributes {stable_mosaic.version = 11 : i64} {
  func.func @_lovasz_grad_dot_kernel(%arg0: i32, %arg1: memref<4x256xf32, #tpu.memory_space<vmem>>, %arg2: memref<4x1xf32, #tpu.memory_space<vmem>>, %arg3: memref<256x256xbf16, #tpu.memory_space<vmem>>, %arg4: memref<4x1xf32, #tpu.memory_space<vmem>>, %arg5: memref<4x1xf32, #tpu.memory_space<vmem>>, %arg6: memref<4x1xf32, #tpu.memory_space<vmem>>) attributes {dimension_semantics = [#tpu.dimension_semantics<arbitrary>], iteration_bounds = array<i64: 2>, scalar_prefetch = 0 : i64, scratch_operands = 2 : i64, tpu.core_type = #tpu.core_type<tc>, window_params = [{transform_indices = @transform_0, window_bounds = array<i64: 4, 256>}, {pipeline_mode = #tpu.pipeline_mode<synchronous>, transform_indices = @transform_1, window_bounds = array<i64: 4, 1>}, {pipeline_mode = #tpu.pipeline_mode<synchronous>, transform_indices = @transform_2, window_bounds = array<i64: 256, 256>}, {pipeline_mode = #tpu.pipeline_mode<synchronous>, transform_indices = @transform_3, window_bounds = array<i64: 4, 1>}]} {
    %c0_i32 = arith.constant 0 : i32
    %0 = arith.cmpi eq, %arg0, %c0_i32 : i32
    %1 = arith.extui %0 : i1 to i32
    %c0_i32_0 = arith.constant 0 : i32
    %2 = arith.cmpi ne, %1, %c0_i32_0 : i32
    scf.if %2 {
      %cst_29 = arith.constant 0.000000e+00 : f32
      %60 = vector.broadcast %cst_29 : f32 to vector<4x1xf32>
      %c0_30 = arith.constant 0 : index
      %c0_31 = arith.constant 0 : index
      %61 = vector.load %arg4[%c0_30, %c0_31] : memref<4x1xf32, #tpu.memory_space<vmem>>, vector<4x1xf32>
      tpu.vector_store %arg4[%c0_30, %c0_31], %60 {strides = array<i32>} : memref<4x1xf32, #tpu.memory_space<vmem>>, vector<4x1xf32>,
      %cst_32 = arith.constant 0.000000e+00 : f32
      %62 = vector.broadcast %cst_32 : f32 to vector<4x1xf32>
      %c0_33 = arith.constant 0 : index
      %c0_34 = arith.constant 0 : index
      %63 = vector.load %arg5[%c0_33, %c0_34] : memref<4x1xf32, #tpu.memory_space<vmem>>, vector<4x1xf32>
      tpu.vector_store %arg5[%c0_33, %c0_34], %62 {strides = array<i32>} : memref<4x1xf32, #tpu.memory_space<vmem>>, vector<4x1xf32>,
      %cst_35 = arith.constant 0.000000e+00 : f32
      %64 = vector.broadcast %cst_35 : f32 to vector<4x1xf32>
      %c0_36 = arith.constant 0 : index
      %c0_37 = arith.constant 0 : index
      %65 = vector.load %arg6[%c0_36, %c0_37] : memref<4x1xf32, #tpu.memory_space<vmem>>, vector<4x1xf32>
      tpu.vector_store %arg6[%c0_36, %c0_37], %64 {strides = array<i32>} : memref<4x1xf32, #tpu.memory_space<vmem>>, vector<4x1xf32>,
    } else {
    }
    %c0 = arith.constant 0 : index
    %c0_1 = arith.constant 0 : index
    %3 = vector.load %arg2[%c0, %c0_1] : memref<4x1xf32, #tpu.memory_space<vmem>>, vector<4x1xf32>
    %c0_2 = arith.constant 0 : index
    %c0_3 = arith.constant 0 : index
    %4 = vector.load %arg3[%c0_2, %c0_3] : memref<256x256xbf16, #tpu.memory_space<vmem>>, vector<256x256xbf16>
    %5 = tpu.iota {dimensions = array<i32: 1>} : vector<4x256xi32>
    %6 = arith.sitofp %5 : vector<4x256xi32> to vector<4x256xf32>
    %c0_i32_4 = arith.constant 0 : i32
    %7 = vector.broadcast %c0_i32_4 : i32 to vector<4x256xi32>
    %8 = arith.cmpi eq, %5, %7 : vector<4x256xi32>
    %c256_i32 = arith.constant 256 : i32
    %9 = arith.muli %arg0, %c256_i32 : i32
    %cst = arith.constant 0.000000e+00 : f32
    %10 = vector.broadcast %cst : f32 to vector<4x1xf32>
    %c0_5 = arith.constant 0 : index
    %c0_6 = arith.constant 0 : index
    %11 = vector.load %arg5[%c0_5, %c0_6] : memref<4x1xf32, #tpu.memory_space<vmem>>, vector<4x1xf32>
    %c0_7 = arith.constant 0 : index
    %c0_8 = arith.constant 0 : index
    %12 = vector.load %arg6[%c0_7, %c0_8] : memref<4x1xf32, #tpu.memory_space<vmem>>, vector<4x1xf32>
    %c0_i32_9 = arith.constant 0 : i32
    %c256_i32_10 = arith.constant 256 : i32
    %13 = arith.muli %c0_i32_9, %c256_i32_10 : i32
    %14 = tpu.assume_multiple %13, 256 : i32
    %c0_11 = arith.constant 0 : index
    %15 = arith.index_cast %14 : i32 to index
    %16 = vector.load %arg1[%c0_11, %15] : memref<4x256xf32, #tpu.memory_space<vmem>>, vector<4x256xf32>
    %17 = tpu.bitcast %16 : vector<4x256xf32> -> vector<4x256xi32>
    %c1_i32 = arith.constant 1 : i32
    %18 = vector.broadcast %c1_i32 : i32 to vector<4x256xi32>
    %19 = arith.andi %17, %18 : vector<4x256xi32>
    %20 = arith.sitofp %19 : vector<4x256xi32> to vector<4x256xf32>
    %cst_12 = arith.constant 0.000000e+00 : f32
    %21 = vector.broadcast %cst_12 : f32 to vector<4x256xf32>
    %22 = arith.subf %21, %16 : vector<4x256xf32>
    %cst_13 = arith.constant 0.000000e+00 : f32
    %23 = vector.broadcast %cst_13 : f32 to vector<4x256xf32>
    %24 = arith.maximumf %22, %23 : vector<4x256xf32>
    %25 = arith.truncf %20 : vector<4x256xf32> to vector<4x256xbf16>
    %cst_14 = arith.constant dense<0.000000e+00> : vector<4x256xf32>
    %26 = tpu.matmul %25, %4, %cst_14 {dimension_numbers = #tpu.dot_dimension_numbers<[1], [0], [0], [1], [0, 0, 1, 1], [], []>} : vector<4x256xbf16>, vector<256x256xbf16>, vector<4x256xf32> -> vector<4x256xf32>
    %27 = vector.broadcast %11 : vector<4x1xf32> to vector<4x256xf32>
    %28 = arith.addf %26, %27 : vector<4x256xf32>
    %c256_i32_15 = arith.constant 256 : i32
    %29 = arith.muli %c0_i32_9, %c256_i32_15 : i32
    %30 = arith.addi %9, %29 : i32
    %c1_i32_16 = arith.constant 1 : i32
    %31 = arith.addi %30, %c1_i32_16 : i32
    %32 = arith.sitofp %31 : i32 to f32
    %33 = vector.broadcast %32 : f32 to vector<4x256xf32>
    %34 = arith.addf %6, %33 : vector<4x256xf32>
    %35 = vector.broadcast %3 : vector<4x1xf32> to vector<4x256xf32>
    %36 = arith.subf %35, %28 : vector<4x256xf32>
    %37 = vector.broadcast %3 : vector<4x1xf32> to vector<4x256xf32>
    %38 = arith.addf %37, %34 : vector<4x256xf32>
    %39 = arith.subf %38, %28 : vector<4x256xf32>
    %40 = tpu.reciprocal %39 : vector<4x256xf32> -> vector<4x256xf32>
    %41 = arith.mulf %36, %40 : vector<4x256xf32>
    %cst_17 = arith.constant 1.000000e+00 : f32
    %42 = vector.broadcast %cst_17 : f32 to vector<4x256xf32>
    %43 = arith.subf %42, %41 : vector<4x256xf32>
    %c1_i32_18 = arith.constant 1 : i32
    %44 = tpu.dynamic_rotate %43 by %c1_i32_18 dim 1 : vector<4x256xf32>, i32 -> vector<4x256xf32>
    %45 = vector.shape_cast %12 : vector<4x1xf32> to vector<4x1xf32>
    %46 = vector.broadcast %45 : vector<4x1xf32> to vector<4x256xf32>
    %47 = arith.select %8, %46, %44 : vector<4x256xi1>, vector<4x256xf32>
    %48 = arith.subf %43, %47 : vector<4x256xf32>
    %49 = arith.mulf %24, %48 : vector<4x256xf32>
    %cst_19 = arith.constant dense<0.000000e+00> : vector<4xf32>
    %50 = vector.multi_reduction <add>, %49, %cst_19 [1] : vector<4x256xf32> to vector<4xf32>
    %51 = vector.shape_cast %50 : vector<4xf32> to vector<4x1xf32>
    %52 = arith.addf %10, %51 : vector<4x1xf32>
    %53 = vector.extract_strided_slice %28 {offsets = [0, 255], sizes = [4, 1], strides = [1, 1]} : vector<4x256xf32> to vector<4x1xf32>
    %54 = vector.extract_strided_slice %43 {offsets = [0, 255], sizes = [4, 1], strides = [1, 1]} : vector<4x256xf32> to vector<4x1xf32>
    %c1_i32_20 = arith.constant 1 : i32
    %c0_21 = arith.constant 0 : index
    %c0_22 = arith.constant 0 : index
    %55 = vector.load %arg4[%c0_21, %c0_22] : memref<4x1xf32, #tpu.memory_space<vmem>>, vector<4x1xf32>
    %56 = arith.addf %55, %52 : vector<4x1xf32>
    %c0_23 = arith.constant 0 : index
    %c0_24 = arith.constant 0 : index
    %57 = vector.load %arg4[%c0_23, %c0_24] : memref<4x1xf32, #tpu.memory_space<vmem>>, vector<4x1xf32>
    tpu.vector_store %arg4[%c0_23, %c0_24], %56 {strides = array<i32>} : memref<4x1xf32, #tpu.memory_space<vmem>>, vector<4x1xf32>,
    %c0_25 = arith.constant 0 : index
    %c0_26 = arith.constant 0 : index
    %58 = vector.load %arg5[%c0_25, %c0_26] : memref<4x1xf32, #tpu.memory_space<vmem>>, vector<4x1xf32>
    tpu.vector_store %arg5[%c0_25, %c0_26], %53 {strides = array<i32>} : memref<4x1xf32, #tpu.memory_space<vmem>>, vector<4x1xf32>,
    %c0_27 = arith.constant 0 : index
    %c0_28 = arith.constant 0 : index
    %59 = vector.load %arg6[%c0_27, %c0_28] : memref<4x1xf32, #tpu.memory_space<vmem>>, vector<4x1xf32>
    tpu.vector_store %arg6[%c0_27, %c0_28], %54 {strides = array<i32>} : memref<4x1xf32, #tpu.memory_space<vmem>>, vector<4x1xf32>,
    return
  }
  func.func @transform_0(%arg0: i32) -> (i32, i32) {
    %c0_i32 = arith.constant 0 : i32
    %c0_i32_0 = arith.constant 0 : i32
    return %c0_i32, %arg0 : i32, i32
  }
  func.func @transform_1(%arg0: i32) -> (i32, i32) {
    %c0_i32 = arith.constant 0 : i32
    %c0_i32_0 = arith.constant 0 : i32
    %c0_i32_1 = arith.constant 0 : i32
    return %c0_i32, %c0_i32_0 : i32, i32
  }
  func.func @transform_2(%arg0: i32) -> (i32, i32) {
    %c0_i32 = arith.constant 0 : i32
    %c0_i32_0 = arith.constant 0 : i32
    %c0_i32_1 = arith.constant 0 : i32
    return %c0_i32, %c0_i32_0 : i32, i32
  }
  func.func @transform_3(%arg0: i32) -> (i32, i32) {
    %c0_i32 = arith.constant 0 : i32
    %c0_i32_0 = arith.constant 0 : i32
    %c0_i32_1 = arith.constant 0 : i32
    return %c0_i32, %c0_i32_0 : i32, i32
  }
}

</mosaic_0001>

<bundles_post_ra>
// kernel: eq.12
= control target key start
LH: loop header
LB: loop body
LE: loop exit
PB: predicated region body
PF: predicated region fallthrough
CT: control target
= control target key end

     0   :  { %2 = vsyncpa [#allocation1], 0  ;;  %s96_s6 = smov [#allocation0]   ;;  %s120_s0 = inlined_call_operand.hbm [shape: s32[2,16,16], index: 0, kind: input, shape index: {}]   ;;  %s121_s1 = inlined_call_operand.vmem [shape: s32[512], index: 1, kind: output, shape index: {}]  }
   0x1   :  { %s7_s7 = sshll.u32 %s96_s6, 4  ;;  %s8_s7 = int_to_ptr.vmem [resolvable:$true] %s7_s7 }
   0x2   :  { %s82_s8 = scalar_lea.vmem %s8_s7, 512  ;;  %p87_p1 = scmp.lt.s32.totalorder %s8_s7, %s8_s7 }
   0x3   :  { %p83_p0 = scmp.ne.s32.totalorder %s8_s7, %s82_s8  ;;  %p88_p2 = scmp.lt.s32.totalorder %s82_s8, %s82_s8 }
   0x5   :  { %p89_p3 = por %p88_p2, %p87_p1 }
   0x7   :  { %p90_p4 = pnand %p89_p3, %p83_p0 }
   0x9   :  { %93 = shalt.err (!%p90_p4)
}
   0xa   :  { %10 = dma.hbm_to_vmem [thread:$0]  %s120_s0, 512, %s8_s7, [#allocation1]  }
   0xb   :  { %94 = dma.done.wait [#allocation1], 512  }
   0xc   :  { %95 = vsyncadd [#allocation1], 4294966784  ;;  %v16_v0 = vld [vmem:[#allocation0 + $0x7] ss:$8 sm:$0xf]   ;;  %s97_s0 = smov 112  }
   0xd   :  { %v28_v1 = vld [vmem:[#allocation0 + $0x5] ss:$8 sm:$0xf]   ;;  %17 = vrot.lane.b32.xlu0 %v16_v0, %s97_s0  ;;  %s98_s11 = smov 80   ;;  %vm13_vm0 = vcmask 130048   ;;  %s99_s12 = smov 96  }
   0xe   :  { %29 = vrot.lane.b32.xlu1 %v28_v1, %s98_s11  ;;  %v22_v2 = vld [vmem:[#allocation0 + $0x6] ss:$8 sm:$0xf]   ;;  %v34_v3 = vld [vmem:[#allocation0 + $0x4] ss:$8 sm:$0xf]  }
   0xf   :  { %v12_v4 = vld [vmem:[#allocation0] ss:$8 sm:$0xf]   ;;  %s100_s13 = smov 64   ;;  %s101_s14 = smov 48   ;;  %vm19_vm1 = vcmask 1048448  }
  0x10   :  { %14 = vst.msk [vmem:[#allocation2] sm:$0xf] %vm13_vm0, %v12_v4   ;;  %v40_v5 = vld [vmem:[#allocation0 + $0x3] ss:$8 sm:$0xf]   ;;  %s102_s15 = smov 32  }
  0x11   :  { %23 = vrot.lane.b32.xlu0 %v22_v2, %s99_s12  ;;  %v46_v6 = vld [vmem:[#allocation0 + $0x2] ss:$8 sm:$0xf]   ;;  %v52_v7 = vld [vmem:[#allocation0 + $0x1] ss:$8 sm:$0xf]  }
  0x12   :  { %35 = vrot.lane.b32.xlu1 %v34_v3, %s100_s13  ;;  %s103_s16 = smov 16   ;;  %vm25_vm2 = vcmask 917248   ;;  %vm31_vm3 = vcmask 786048   ;;  %vm37_vm4 = vcmask 654848   ;;  %vm43_vm5 = vcmask 523648  }
  0x13   :  { %vm49_vm6 = vcmask 392448   ;;  %vm55_vm7 = vcmask 261248  }
  0x15   :  { %41 = vrot.lane.b32.xlu0 %v40_v5, %s101_s14 }
  0x16   :  { %47 = vrot.lane.b32.xlu1 %v46_v6, %s102_s15 }
  0x19   :  { %53 = vrot.lane.b32.xlu0 %v52_v7, %s103_s16 }
  0x7f   :  { %v18_v8 = vpop.permute.xlu0 %17  }
  0x80   :  { %v30_v9 = vpop.permute.xlu1 %29   ;;  %20 = vst.msk [vmem:[#allocation2] sm:$0xf] %vm19_vm1, %v18_v8  }
  0x83   :  { %v24_v10 = vpop.permute.xlu0 %23  }
  0x84   :  { %v36_v11 = vpop.permute.xlu1 %35   ;;  %26 = vst.msk [vmem:[#allocation2] sm:$0xf] %vm25_vm2, %v24_v10  }
  0x85   :  { %32 = vst.msk [vmem:[#allocation2] sm:$0xf] %vm31_vm3, %v30_v9  }
  0x86   :  { %38 = vst.msk [vmem:[#allocation2] sm:$0xf] %vm37_vm4, %v36_v11  }
  0x87   :  { %v42_v12 = vpop.permute.xlu0 %41  }
  0x88   :  { %v48_v13 = vpop.permute.xlu1 %47   ;;  %44 = vst.msk [vmem:[#allocation2] sm:$0xf] %vm43_vm5, %v42_v12  }
  0x89   :  { %50 = vst.msk [vmem:[#allocation2] sm:$0xf] %vm49_vm6, %v48_v13  }
  0x8b   :  { %v54_v14 = vpop.permute.xlu0 %53  }
  0x8c   :  { %56 = vst.msk [vmem:[#allocation2] sm:$0xf] %vm55_vm7, %v54_v14  }
  0x93   :  { %v61_v15 = vld [vmem:[#allocation2] sm:$0xf] }
  0x94   :  { %64 = vst [vmem:[%s121_s1] sm:$0xf] %v61_v15 }
  0x95   :  { %65 = vsyncpa [#allocation1], 1 }

// kernel: a_call__.2
= control target key start
LH: loop header
LB: loop body
LE: loop exit
PB: predicated region body
PF: predicated region fallthrough
CT: control target
= control target key end

     0   :  { %s524_s9 = smov 0   ;;  %s526_s10 = smov 0   ;;  %s577_s0 = inlined_call_operand.vmem [shape: f32[2,4,256], index: 0, kind: input, shape index: {}]   ;;  %s578_s1 = inlined_call_operand.vmem [shape: s32[2,1,256], index: 1, kind: input, shape index: {}]   ;;  %s579_s2 = inlined_call_operand.vmem [shape: f32[4,512], index: 2, kind: output, shape index: {}]  }
   0x1   :  { %s528_s11 = smov 0  }
   0x2 LB: > { %s24_s12 = sadd.s32 1, %s499_s10  ;;  %p435_p0 = scmp.ge.s32.totalorder %s503_s11, 1  ;;  %s503_s11 = sphi %s528_s11, %s12_s11   ;;  %s499_s10 = sphi %s526_s10, %s581_s10   ;;  %s495_s9 = sphi %s524_s9, %s580_s9  }
   0x3   : > { %p26_p1 = scmp.ge.s32.totalorder %s24_s12, 2  ;;  %p149_p2 = scmp.lt.s32.totalorder %s503_s11, 3 }
   0x5   : > { %s583_s12 = smov (%p26_p1, %s24_s12), 0  ;;  %p150_p3 = pnand %p435_p0, %p149_p2 }
   0x6   : > { %p185_p4 = scmp.lt.s32.totalorder (!%p150_p3), %s495_s9, 1  ;;  %s439_s22 = sshll.u32 (!%p150_p3), %s495_s9, 1 }
   0x7   : > { %153 = sbr.rel (%p150_p3) target bundleno = 101 (0x65), region = 28  ;;  %p205_p5 = scmp.lt.s32.totalorder (!%p150_p3), %s439_s22, 3 }
   0xc   : > { %s546_s13 = scalar_select %p185_p4, %s495_s9, 1  ;;  %vm245_vm0 = vcmask 1043456   ;;  %v505_v28 = vmov 1966171168   ;;  %v229_v32 = vlaneseq  ;;  %v506_v40 = vmov 1  }
   0xd   : > { %v227_v29 = vunpack.c.l.s4 %v505_v28  ;;  %v225_v41 = vcombine.low %v506_v40, %v506_v40  ;;  %v507_v53 = vmov 0.0   ;;  %v508_v59 = vmov 0   ;;  %s585_s22 = smov (!%p205_p5, %s439_s22), 3 }
   0xe   : > { %s445_s14 = sshll.u32 %s546_s13, 3  ;;  %v230_v38 = vshrl.u32 %v229_v32, 7  ;;  %s438_s18 = sshll.u32 %s546_s13, 1 }
   0xf   : > { %s192_s17 = scalar_lea.vmem %s577_s0, %s445_s14  ;;  %v228_v35 = vunpack.c.0.s8 %v227_v29  ;;  %s201_s21 = scalar_lea.vmem %s578_s1, %s438_s18 }
  0x10   : > { %v211_v0 = vld [vmem:[%s192_s17] sm:$0xff]  ;;  %v295_v44 = vsub.s32 0, %v230_v38  ;;  %v299_v46 = vsub.s32 1, %v230_v38  ;;  %s440_s23 = sshll.u32 %s585_s22, 2 }
  0x11   : > { %v243_v1 = vcombine.high %v211_v0, %v211_v0  ;;  %v246_v2 = vsel %vm245_vm0, %v211_v0, -inf  ;;  %v231_v42 = vsub.s32 %v228_v35, %v230_v38  ;;  %v212_v45 = vld [vmem:[%s201_s21] sm:$0x3]  ;;  %s208_s26 = scalar_lea.vmem %s579_s2, %s440_s23 }
  0x12   : > { %v247_v3 = vrot.slane %v246_v2, 4  ;;  %v296_v48 = vrot.slane %v212_v45, %v295_v44  ;;  %v300_v49 = vrot.slane %v212_v45, %v299_v46  ;;  %vm222_vm1 = vcmp.ne.s32.totalorder %v212_v45, 255 }
  0x13   : > { %v253_v4 = vsel %vm245_vm0, %v243_v1, -inf  ;;  %v232_v43 = vrot.slane %v225_v41, %v231_v42 }
  0x14   : > { %v248_v5 = vmax.f32 %v246_v2, %v247_v3  ;;  %v254_v6 = vrot.slane %v253_v4, 4  ;;  %vm301_vm3 = vcmp.eq.s32.totalorder %v296_v48, %v230_v38  ;;  %vm302_vm4 = vcmp.eq.s32.totalorder %v300_v49, %v230_v38 }
  0x15   : > { %v239_v47 = vrot.slane %v232_v43, %v231_v42  ;;  %v441_v54 = vsel %vm301_vm3, 1.0, %v507_v53  ;;  %v442_v56 = vsel %vm302_vm4, 1.0, %v507_v53  ;;  %v303_v2 = vsel %vm301_vm3, 1, %v508_v59 }
  0x16   : > { %v249_v7 = vrot.slane %v248_v5, 2  ;;  %v255_v8 = vmax.f32 %v253_v4, %v254_v6  ;;  %v304_v6 = vsel %vm302_vm4, 1, %v508_v59 }
  0x17   : > { %vm240_vm2 = vcmp.ne.s32.totalorder %v239_v47, 0 }
  0x18   : > { %v250_v9 = vmax.f32 %v248_v5, %v249_v7  ;;  %v256_v10 = vrot.slane %v255_v8, 2  ;;  %vm241_vm5 = vmand %vm222_vm1, %vm240_vm2 }
  0x19   : > { %v324_v60 = vsel %vm241_vm5, 1, %v508_v59 }
  0x1a   : > { %v251_v11 = vrot.slane %v250_v9, 1  ;;  %v257_v12 = vmax.f32 %v255_v8, %v256_v10  ;;  %v328_v63 = vrot.slane %v324_v60, %v295_v44  ;;  %v332_v3 = vrot.slane %v324_v60, %v299_v46 }
  0x1c   : > { %v252_v13 = vmax.f32 %v250_v9, %v251_v11  ;;  %v258_v14 = vrot.slane %v257_v12, 1  ;;  %vm333_vm6 = vcmp.eq.s32.totalorder %v328_v63, 1  ;;  %vm334_vm7 = vcmp.eq.s32.totalorder %v332_v3, 1 }
  0x1e   : > { %v259_v15 = vmax.f32 %v257_v12, %v258_v14 }
  0x20   : > { %v262_v16 = vcombine.low %v252_v13, %v259_v15 }
  0x22   : > { %v264_v17 = vsub.f32 %v211_v0, %v262_v16 }
  0x24   : > { %v265_v18 = vmul.f32 1.442695, %v264_v17 }
  0x26   : > { %475 = vpow2.f32 %v265_v18 }
  0x33   : > { %v476_v19 = vpop.eup %475 }
  0x34   : > { %v268_v20 = vcombine.high %v476_v19, %v476_v19  ;;  %v270_v21 = vsel %vm245_vm0, %v476_v19, 0.0 }
  0x35   : > { %v271_v22 = vrot.slane %v270_v21, 4 }
  0x36   : > { %v277_v23 = vsel %vm245_vm0, %v268_v20, 0.0 }
  0x37   : > { %v272_v24 = vadd.f32 %v271_v22, %v270_v21  ;;  %v278_v25 = vrot.slane %v277_v23, 4 }
  0x39   : > { %v273_v26 = vrot.slane %v272_v24, 2  ;;  %v279_v27 = vadd.f32 %v278_v25, %v277_v23 }
  0x3b   : > { %v274_v30 = vadd.f32 %v273_v26, %v272_v24  ;;  %v280_v31 = vrot.slane %v279_v27, 2 }
  0x3d   : > { %v275_v33 = vrot.slane %v274_v30, 1  ;;  %v281_v34 = vadd.f32 %v280_v31, %v279_v27 }
  0x3f   : > { %v276_v36 = vadd.f32 %v275_v33, %v274_v30  ;;  %v282_v37 = vrot.slane %v281_v34, 1 }
  0x41   : > { %v283_v39 = vadd.f32 %v282_v37, %v281_v34  ;;  %477 = vrcp.f32 %v276_v36 }
  0x43   : > { %479 = vrcp.f32 %v283_v39 }
  0x4e   : > { %v478_v50 = vpop.eup %477 }
  0x50   : > { %v480_v51 = vpop.eup %479 }
  0x51   : > { %v288_v52 = vcombine.low %v478_v50, %v480_v51 }
  0x53   : > { %v290_v55 = vmul.f32 %v476_v19, %v288_v52 }
  0x55   : > { %v308_v57 = vcombine.high %v290_v55, %v290_v55  ;;  %v310_v58 = vsub.f32 %v441_v54, %v290_v55 }
  0x57   : > { %v311_v61 = vsub.f32 %v442_v56, %v308_v57  ;;  %v312_v62 = vand.u32 2147483647, %v310_v58 }
  0x59   : > { %v313_v0 = vand.u32 2147483647, %v311_v61  ;;  %v314_v1 = vsub.f32 0.0, %v312_v62 }
  0x5b   : > { %v315_v4 = vsub.f32 0.0, %v313_v0  ;;  %v318_v5 = vand.u32 4294967294, %v314_v1 }
  0x5d   : > { %v319_v7 = vand.u32 4294967294, %v315_v4  ;;  %v320_v8 = vor.u32 %v318_v5, %v303_v2 }
  0x5f   : > { %v321_v9 = vor.u32 %v319_v7, %v304_v6  ;;  %v335_v10 = vsel %vm333_vm6, %v320_v8, 1.0 }
  0x61   : > { %v336_v11 = vsel %vm334_vm7, %v321_v9, 1.0 }
  0x62   : > { %v339_v12 = vcombine.low %v335_v10, %v336_v11 }
  0x64   : > { %341 = vst [vmem:[%s208_s26] sm:$0xff] %v339_v12 }
  0x65 PF: > { %s12_s11 = sadd.s32 1, %s503_s11   ;;  %s580_s9 = smov %s499_s10 }
  0x66   : > { %p9_p6 = scmp.ge.s32.totalorder %s12_s11, 4   ;;  %s581_s10 = smov %s583_s12 }
  0x68   :  { %11 = sbr.rel (!%p9_p6) target bundleno = 2 (0x2), region = 61 }

// kernel: a_call__.3
= control target key start
LH: loop header
LB: loop body
LE: loop exit
PB: predicated region body
PF: predicated region fallthrough
CT: control target
= control target key end

     0   :  { %s660_s12 = smov 0   ;;  %s799_s0 = inlined_call_operand.vmem [shape: f32[4,512], index: 0, kind: input, shape index: {}]   ;;  %s800_s1 = inlined_call_operand.vmem [shape: f32[4,1], index: 1, kind: input, shape index: {}]   ;;  %s801_s2 = inlined_call_operand.vmem [shape: bf16[256,256], index: 2, kind: input, shape index: {}]   ;;  %s802_s3 = inlined_call_operand.vmem [shape: f32[4,1], index: 3, kind: output, shape index: {}]  }
   0x1 LB: > { %s666_s13 = sadd.s32 4294967295, %s635_s12   ;;  %p524_p0 = scmp.ge.s32.totalorder %s635_s12, 1  ;;  %s635_s12 = sphi %s660_s12, %s13_s12  }
   0x2   : > { %p133_p1 = scmp.lt.s32.totalorder %s635_s12, 3 }
   0x4   : > { %p134_p2 = pnand %p524_p0, %p133_p1 }
   0x5   : > { %s525_s14 = sshll.u32 (!%p134_p2), %s666_s13, 1  ;;  %p527_p4 = scmp.ne.s32.totalorder (!%p134_p2), %s666_s13, 0 }
   0x6   : > { %137 = sbr.rel (%p134_p2) target bundleno = 571 (0x23b), region = 32  ;;  %p153_p3 = scmp.lt.s32.totalorder (!%p134_p2), %s525_s14, 3 }
   0xb   : > { %s804_s14 = smov (!%p153_p3, %s525_s14), 3  ;;  %161 = sbr.rel (%p527_p4) target bundleno = 19 (0x13), region = 36 }
   0xc   : > { %s526_s15 = sshll.u32 %s804_s14, 2 }
   0xd   : > { %s674_s18 = scalar_lea.vmem %s799_s0, %s526_s15 }
  0x10   : > { %vm162_vm0 = vcmask 3072   ;;  %v637_v0 = vmov 0.0  }
  0x11   : > { %163 = vst.msk [vmem:[%s802_s3] sm:$0xf] %vm162_vm0, %v637_v0  ;;  %164 = vst.msk [vmem:[#allocation2] sm:$0xf] %vm162_vm0, %v637_v0 }
  0x12   : > { %165 = vst.msk [vmem:[#allocation3] sm:$0xf] %vm162_vm0, %v637_v0 }
  0x13 PF: > { %v576_v1 = vld [vmem:[%s801_s2 + $0x74] ss:$8 sps:$4 sm:$0xff]   ;;  %v578_v2 = vld [vmem:[%s801_s2 + $0x70] ss:$8 sps:$4 sm:$0xff]   ;;  %v638_v3 = vmov 0   ;;  %v720_v15 = vld [vmem:[%s674_s18] sm:$0xff]  ;;  %v199_v45 = vlaneseq }
  0x14   : > { %574 = vset.pattern.permute.xlu0 %v638_v3  ;;  %575 = vset.pattern.permute.xlu1 %v638_v3  ;;  %v579_v4 = vld [vmem:[%s801_s2 + $0x64] ss:$8 sps:$4 sm:$0xff]   ;;  %v581_v5 = vld [vmem:[%s801_s2 + $0x60] ss:$8 sps:$4 sm:$0xff]   ;;  %v582_v6 = vld [vmem:[%s801_s2 + $0x54] ss:$8 sps:$4 sm:$0xff]   ;;  %v211_v17 = vcombine.high %v720_v15, %v720_v15 }
  0x15   : > { %385 = vmatprep.subr.bf16.mxu0 %v576_v1  ;;  %v584_v7 = vld [vmem:[%s801_s2 + $0x50] ss:$8 sps:$4 sm:$0xff]   ;;  %v585_v8 = vld [vmem:[%s801_s2 + $0x44] ss:$8 sps:$4 sm:$0xff]   ;;  %v587_v9 = vld [vmem:[%s801_s2 + $0x40] ss:$8 sps:$4 sm:$0xff]  }
  0x16   : > { %386 = vmatpush1.bf16.msra.mxu0 %v578_v2  ;;  %v588_v10 = vld [vmem:[%s801_s2 + $0x34] ss:$8 sps:$4 sm:$0xff]   ;;  %v590_v11 = vld [vmem:[%s801_s2 + $0x30] ss:$8 sps:$4 sm:$0xff]   ;;  %v591_v12 = vld [vmem:[%s801_s2 + $0x24] ss:$8 sps:$4 sm:$0xff]  }
  0x17   : > { %387 = vmatprep.subr.bf16.mxu0 %v579_v4  ;;  %v593_v13 = vld [vmem:[%s801_s2 + $0x20] ss:$8 sps:$4 sm:$0xff]   ;;  %v594_v14 = vld [vmem:[%s801_s2 + $0x14] ss:$8 sps:$4 sm:$0xff]   ;;  %v596_v18 = vld [vmem:[%s801_s2 + $0x10] ss:$8 sps:$4 sm:$0xff]  }
  0x18   : > { %v207_v16 = vld [vmem:[#allocation2] sm:$0xf]  ;;  %v597_v20 = vld [vmem:[%s801_s2 + $0x4] ss:$8 sps:$4 sm:$0xff]   ;;  %v213_v21 = vand.u32 1, %v211_v17  ;;  %v212_v38 = vand.u32 1, %v720_v15 }
  0x19   : > { %222 = vperm.xlu0 %574, %v207_v16   ;;  %v166_v19 = vld [vmem:[%s800_s1] sm:$0xf]  ;;  %v600_v24 = vld [vmem:[%s801_s2 + $0xf4] ss:$8 sps:$4 sm:$0xff]   ;;  %v602_v26 = vld [vmem:[%s801_s2 + $0xf0] ss:$8 sps:$4 sm:$0xff]  }
  0x1a   : > { %388 = vmatpush1.bf16.msra.mxu0 %v581_v5  ;;  %v217_v22 = vcvt.s32.f32 %v213_v21  ;;  %v599_v23 = vld [vmem:[%s801_s2] ss:$8 sps:$4 sm:$0xff]   ;;  %v603_v27 = vld [vmem:[%s801_s2 + $0xe4] ss:$8 sps:$4 sm:$0xff]   ;;  %v606_v29 = vld [vmem:[%s801_s2 + $0xd4] ss:$8 sps:$4 sm:$0xff]   ;;  %v216_v41 = vcvt.s32.f32 %v212_v38 }
  0x1b   : > { %389 = vmatprep.subr.bf16.mxu0 %v582_v6  ;;  %v605_v28 = vld [vmem:[%s801_s2 + $0xe0] ss:$8 sps:$4 sm:$0xff]   ;;  %v608_v30 = vld [vmem:[%s801_s2 + $0xd0] ss:$8 sps:$4 sm:$0xff]   ;;  %v609_v31 = vld [vmem:[%s801_s2 + $0xc4] ss:$8 sps:$4 sm:$0xff]  }
  0x1c   : > { %v219_v25 = vpack.c.bf16 %v217_v22, %v217_v22  ;;  %v611_v32 = vld [vmem:[%s801_s2 + $0xc0] ss:$8 sps:$4 sm:$0xff]   ;;  %v612_v33 = vld [vmem:[%s801_s2 + $0xb4] ss:$8 sps:$4 sm:$0xff]   ;;  %v614_v34 = vld [vmem:[%s801_s2 + $0xb0] ss:$8 sps:$4 sm:$0xff]   ;;  %v218_v43 = vpack.c.bf16 %v216_v41, %v216_v41 }
  0x1d   : > { %433 = vperm.xlu0 %574, %v166_v19   ;;  %v615_v35 = vld [vmem:[%s801_s2 + $0xa4] ss:$8 sps:$4 sm:$0xff]   ;;  %v617_v36 = vld [vmem:[%s801_s2 + $0xa0] ss:$8 sps:$4 sm:$0xff]   ;;  %v618_v37 = vld [vmem:[%s801_s2 + $0x94] ss:$8 sps:$4 sm:$0xff]  }
  0x1e   : > { %390 = vmatpush1.bf16.msra.mxu0 %v584_v7  ;;  %417 = vmatprep.mubr.bf16.mxu0 %v219_v25  ;;  %v620_v39 = vld [vmem:[%s801_s2 + $0x90] ss:$8 sps:$4 sm:$0xff]   ;;  %v621_v40 = vld [vmem:[%s801_s2 + $0x84] ss:$8 sps:$4 sm:$0xff]   ;;  %v623_v42 = vld [vmem:[%s801_s2 + $0x80] ss:$8 sps:$4 sm:$0xff]  }
  0x1f   : > { %391 = vmatprep.subr.bf16.mxu0 %v585_v8  ;;  %v208_v44 = vld [vmem:[#allocation3] sm:$0xf]  ;;  %s528_s10 = sshll.u32 %s666_s13, 8  ;;  %v200_v46 = vand.u32 127, %v199_v45  ;;  %s639_s13 = smov 1   ;;  %vm481_vm3 = vcmask 3072  }
  0x20   : > { %457 = vperm.xlu1 %575, %v208_v44   ;;  %s426_s11 = sadd.s32 1, %s528_s10  ;;  %vm472_vm4 = vcmask 1043456  }
  0x21   : > { %s427_s14 = scvt.s32.f32 %s426_s11  ;;  %v201_v47 = vadd.s32 128, %v200_v46  ;;  %v202_v49 = vcvt.s32.f32 %v200_v46  ;;  %vm452_vm1 = vcmp.lt.s32.totalorder %v200_v46, 1  ;;  %vm204_vm2 = vcmp.eq.s32.totalorder %v200_v46, 0 }
  0x22   : > { %392 = vmatpush1.bf16.msra.mxu0 %v587_v9 }
  0x23   : > { %393 = vmatprep.subr.bf16.mxu0 %v588_v10  ;;  %v428_v50 = vstv %s427_s14  ;;  %v203_v51 = vcvt.s32.f32 %v201_v47  ;;  %v214_v10 = vsub.f32 0.0, %v720_v15 }
  0x24   : > { %v429_v52 = vadd.f32 %v428_v50, %v202_v49 }
  0x25   : > { %v430_v54 = vadd.f32 %v428_v50, %v203_v51  ;;  %v215_v19 = vmax.f32 %v214_v10, 0.0 }
  0x26   : > { %394 = vmatpush1.bf16.msra.mxu0 %v590_v11 }
  0x27   : > { %395 = vmatprep.subr.bf16.mxu0 %v591_v12 }
  0x2a   : > { %396 = vmatpush1.bf16.msra.mxu0 %v593_v13 }
  0x2b   : > { %397 = vmatprep.subr.bf16.mxu0 %v594_v14 }
  0x2e   : > { %398 = vmatpush1.bf16.msra.mxu0 %v596_v18 }
  0x2f   : > { %399 = vmatprep.subr.bf16.mxu0 %v597_v20 }
  0x32   : > { %400 = vmatpush1.bf16.msra.mxu0 %v599_v23 }
  0x33   : > { %401 = vmatprep.subr.bf16.mxu0 %v600_v24 }
  0x36   : > { %402 = vmatpush2.bf16.msra.mxu0 %v602_v26 }
  0x37   : > { %403 = vmatprep.subr.bf16.mxu0 %v603_v27  ;;  %v479_v27 = vld [vmem:[%s802_s3] sm:$0xf] }
  0x3a   : > { %404 = vmatpush2.bf16.msra.mxu0 %v605_v28 }
  0x3b   : > { %405 = vmatprep.subr.bf16.mxu0 %v606_v29 }
  0x3e   : > { %406 = vmatpush2.bf16.msra.mxu0 %v608_v30 }
  0x3f   : > { %407 = vmatprep.subr.bf16.mxu0 %v609_v31 }
  0x42   : > { %408 = vmatpush2.bf16.msra.mxu0 %v611_v32 }
  0x43   : > { %409 = vmatprep.subr.bf16.mxu0 %v612_v33 }
  0x46   : > { %410 = vmatpush2.bf16.msra.mxu0 %v614_v34 }
  0x47   : > { %411 = vmatprep.subr.bf16.mxu0 %v615_v35 }
  0x4a   : > { %412 = vmatpush2.bf16.msra.mxu0 %v617_v36 }
  0x4b   : > { %413 = vmatprep.subr.bf16.mxu0 %v618_v37 }
  0x4e   : > { %414 = vmatpush2.bf16.msra.mxu0 %v620_v39 }
  0x4f   : > { %415 = vmatprep.subr.bf16.mxu0 %v621_v40 }
  0x52   : > { %416 = vmatpush2.bf16.msra.mxu0 %v623_v42 }
  0x55   : > { %418 = vmatmul.mubr.bf16.vlgmr.msra.gmra.mxu0 %v218_v43 }
  0x94   : > { %v223_v48 = vpop.permute.xlu0 %222 }
  0x98   : > { %v434_v53 = vpop.permute.xlu0 %433 }
  0x99   : > { %v438_v57 = vadd.f32 %v434_v53, %v429_v52  ;;  %v439_v59 = vadd.f32 %v434_v53, %v430_v54 }
  0x9b   : > { %v458_v9 = vpop.permute.xlu1 %457 }
 0x115   : > { %v419_v55 = vpop.f32.mrf.mxu0 }
 0x116   : > { %v420_v56 = vadd.f32 %v419_v55, %v223_v48 }
 0x117   : > { %v421_v58 = vpop.f32.mrf.mxu0 }
 0x118   : > { %v440_v60 = vsub.f32 %v438_v57, %v420_v56  ;;  %v422_v61 = vadd.f32 %v421_v58, %v223_v48  ;;  %v436_v1 = vsub.f32 %v434_v53, %v420_v56 }
 0x119   : > { %v423_v62 = vpop.f32.mrf.mxu0 }
 0x11a   : > { %625 = vrcp.f32 %v440_v60  ;;  %v441_v63 = vsub.f32 %v439_v59, %v422_v61  ;;  %v437_v3 = vsub.f32 %v434_v53, %v422_v61 }
 0x11b   : > { %v424_v0 = vpop.f32.mrf.mxu0 }
 0x11c   : > { %627 = vrcp.f32 %v441_v63 }
 0x127   : > { %v626_v2 = vpop.eup %625 }
 0x128   : > { %v444_v4 = vmul.f32 %v626_v2, %v436_v1 }
 0x129   : > { %v628_v5 = vpop.eup %627 }
 0x12a   : > { %v446_v6 = vsub.f32 1.0, %v444_v4  ;;  %v445_v7 = vmul.f32 %v628_v5, %v437_v3 }
 0x12c   : > { %448 = vrot.lane.b32.xlu1 %v446_v6, %s639_s13  ;;  %v447_v8 = vsub.f32 1.0, %v445_v7 }
 0x12e   : > { %450 = vrot.lane.b32.xlu0 %v447_v8, %s639_s13 }
 0x132   : > { %484 = vrot.lane.b32.xlu0 %v422_v61, %s639_s13 }
 0x136   : > { %489 = vrot.lane.b32.xlu0 %v447_v8, %s639_s13 }
 0x19e   : > { %v449_v11 = vpop.permute.xlu1 %448 }
 0x1a0   : > { %v451_v12 = vpop.permute.xlu0 %450 }
 0x1a1   : > { %v453_v13 = vsel %vm452_vm1, %v449_v11, %v451_v12  ;;  %v454_v14 = vsel %vm452_vm1, %v451_v12, %v449_v11 }
 0x1a2   : > { %v460_v16 = vsel %vm204_vm2, %v458_v9, %v454_v14  ;;  %v463_v17 = vsub.f32 %v447_v8, %v453_v13 }
 0x1a3   : > { %v462_v18 = vsub.f32 %v446_v6, %v460_v16 }
 0x1a4   : > { %v485_v20 = vpop.permute.xlu0 %484 }
 0x1a5   : > { %v466_v21 = vcombine.low %v462_v18, %v463_v17  ;;  %487 = vst.msk [vmem:[#allocation2] sm:$0xf] %vm481_vm3, %v485_v20 }
 0x1a7   : > { %v468_v22 = vmul.f32 %v466_v21, %v215_v19 }
 0x1a8   : > { %v490_v23 = vpop.permute.xlu0 %489 }
 0x1a9   : > { %492 = vst.msk [vmem:[#allocation3] sm:$0xf] %vm481_vm3, %v490_v23  ;;  %v470_v15 = vcombine.high %v468_v22, %v468_v22  ;;  %v473_v24 = vsel %vm472_vm4, %v468_v22, 0.0 }
 0x1ab   : > { %v474_v25 = vsel %vm472_vm4, %v470_v15, 0.0 }
 0x1ac   : > { %v475_v26 = vadd.f32 %v474_v25, %v473_v24 }
 0x1ae   : > { %476 = vadd.xlane.f32.xlu1 %v475_v26 }
 0x237   : > { %v477_v28 = vpop.xlane.xlu1 %476 }
 0x238   : > { %v480_v29 = vadd.f32 %v479_v27, %v477_v28 }
 0x23a   : > { %482 = vst.msk [vmem:[%s802_s3] sm:$0xf] %vm481_vm3, %v480_v29 }
 0x23b PF: > { %s13_s12 = sadd.s32 1, %s635_s12  }
 0x23c   : > { %p10_p5 = scmp.ge.s32.totalorder %s13_s12, 4  }
 0x23e   :  { %12 = sbr.rel (!%p10_p5) target bundleno = 1 (0x1), region = 62 }

</bundles_post_ra>
